<compile_context>
chip_gen: v5e
topology: v5e:2x2
jax: 0.10.0
libtpu: 0.0.40
codegen_flags: <defaults>
</compile_context>

<pallas_src>
import functools

import jax
import jax.numpy as jnp
from jax import lax
from jax.experimental import pallas as pl
from jax.experimental.pallas import tpu as pltpu


# ---------------------------------------------------------------------------
# helpers
# ---------------------------------------------------------------------------
def _full_spec(shape):
    """Whole-array block (block_shape == array shape) on a trivial grid=(1,)."""
    nd = len(shape)
    return pl.BlockSpec(shape, lambda i, _nd=nd: (0,) * _nd)


def _elu(v):
    # ELU(alpha=1).
    return jnp.where(v > 0, v, jnp.exp(v) - 1.0)


def _pick_tile(n, max_t):
    """Largest power-of-two tile <= max_t that divides n (>=16 for bf16 tiling),
    else fall back to the full dimension."""
    if n <= max_t:
        return n
    t = max_t
    while t > 16 and n % t != 0:
        t //= 2
    return t if n % t == 0 else n  # TODO(synk): pad+mask for awkward N instead


# ---------------------------------------------------------------------------
# Kernel A: per-node-type embedding + contrast projection (row-tiled)
# ---------------------------------------------------------------------------
def _embed_kernel(x_ref, wf_ref, bf_ref, w1_ref, b1_ref, w2_ref, b2_ref,
                  h_ref, zn_ref, *, inv_sqrt_tau):
    f32, bf16 = jnp.float32, jnp.bfloat16
    h = _elu(jnp.dot(x_ref[...], wf_ref[...], preferred_element_type=f32)
             + bf_ref[...])
    h_ref[...] = h
    p1 = _elu(jnp.dot(h.astype(bf16), w1_ref[...], preferred_element_type=f32)
              + b1_ref[...])
    zp = jnp.dot(p1.astype(bf16), w2_ref[...], preferred_element_type=f32) + b2_ref[...]
    inv_norm = lax.rsqrt(jnp.sum(zp * zp, axis=-1, keepdims=True) + 1e-12)
    # fold 1/tau here (once over N*H) instead of scaling the N^2 score matrix
    zn_ref[...] = (zp * (inv_norm * inv_sqrt_tau)).astype(zn_ref.dtype)


def _project_embed(x, fc, contrast, tau, max_rows=512):
    n, d = x.shape
    hdim = fc["w"].shape[1]
    tn = _pick_tile(n, max_rows)
    grid = (n // tn,)
    args = (x.astype(jnp.bfloat16),
            fc["w"].astype(jnp.bfloat16), fc["b"],
            contrast["w1"].astype(jnp.bfloat16), contrast["b1"],
            contrast["w2"].astype(jnp.bfloat16), contrast["b2"])
    kernel = functools.partial(_embed_kernel,
                               inv_sqrt_tau=float(1.0 / (tau ** 0.5)))
    h, zn = pl.pallas_call(
        kernel,
        out_shape=(jax.ShapeDtypeStruct((n, hdim), jnp.float32),
                   jax.ShapeDtypeStruct((n, hdim), jnp.bfloat16)),
        grid=grid,
        in_specs=[pl.BlockSpec((tn, d), lambda i: (i, 0)),
                  pl.BlockSpec((d, hdim), lambda i: (0, 0)),
                  pl.BlockSpec((1, hdim), lambda i: (0, 0)),
                  pl.BlockSpec((hdim, hdim), lambda i: (0, 0)),
                  pl.BlockSpec((1, hdim), lambda i: (0, 0)),
                  pl.BlockSpec((hdim, hdim), lambda i: (0, 0)),
                  pl.BlockSpec((1, hdim), lambda i: (0, 0))],
        out_specs=(pl.BlockSpec((tn, hdim), lambda i: (i, 0)),
                   pl.BlockSpec((tn, hdim), lambda i: (i, 0))),
        compiler_params=pltpu.CompilerParams(
            dimension_semantics=("parallel",)),
    )(*args)
    return h, zn


# ---------------------------------------------------------------------------
# Kernel B: contrast loss, flash-style tiled (never holds the full NxN sim)
# ---------------------------------------------------------------------------
def _contrast_kernel(znr_ref, znc_ref, pos_ref, loss_ref, rs_ref, num_ref, *, inv_n):
    i = pl.program_id(0)
    j = pl.program_id(1)

    @pl.when(jnp.logical_and(i == 0, j == 0))
    def _():
        loss_ref[...] = jnp.zeros_like(loss_ref)

    @pl.when(j == 0)
    def _():
        rs_ref[...] = jnp.zeros_like(rs_ref)
        num_ref[...] = jnp.zeros_like(num_ref)

    # exp(<zn_i, zn_j> / tau); zn already row-normalized and scaled by 1/sqrt(tau)
    s = jnp.exp(lax.dot_general(
        znr_ref[...], znc_ref[...],
        dimension_numbers=(((1,), (1,)), ((), ())),
        preferred_element_type=jnp.float32))
    pos = pos_ref[...].astype(jnp.float32)
    rs_ref[...] += jnp.sum(s, axis=1, keepdims=True)
    num_ref[...] += jnp.sum(s * pos, axis=1, keepdims=True)

    @pl.when(j == pl.num_programs(1) - 1)
    def _():
        # z_mp == z_sc -> sim symmetric -> lori_sc == lori_mp; report lori_mp.
        contrib = jnp.sum(jnp.log(rs_ref[...] + 1e-8) - jnp.log(num_ref[...]))
        loss_ref[...] += contrib * inv_n


def _contrast_loss(zn, pos_bf16, max_tile=256):
    n, hdim = zn.shape
    tr = _pick_tile(n, max_tile)
    tc = _pick_tile(n, max_tile)
    grid = (n // tr, n // tc)
    kernel = functools.partial(_contrast_kernel, inv_n=float(1.0 / n))
    loss = pl.pallas_call(
        kernel,
        out_shape=jax.ShapeDtypeStruct((1, 1), jnp.float32),
        grid=grid,
        in_specs=[pl.BlockSpec((tr, hdim), lambda i, j: (i, 0)),
                  pl.BlockSpec((tc, hdim), lambda i, j: (j, 0)),
                  pl.BlockSpec((tr, tc), lambda i, j: (i, j))],
        out_specs=pl.BlockSpec((1, 1), lambda i, j: (0, 0)),
        scratch_shapes=[pltpu.VMEM((tr, 1), jnp.float32),
                        pltpu.VMEM((tr, 1), jnp.float32)],
        compiler_params=pltpu.CompilerParams(
            dimension_semantics=("arbitrary", "arbitrary"),
            vmem_limit_bytes=32 * 1024 * 1024),
    )(zn, zn, pos_bf16)
    return loss[0, 0]


# ---------------------------------------------------------------------------
# Kernel C: prediction MLP + log_softmax + NLL (lane-dense padded logits)
# ---------------------------------------------------------------------------
def _pred_kernel(hg_ref, hd_ref, w1g_ref, w1d_ref, b1_ref, w2_ref, b2_ref, oh_ref,
                 y_ref, tl_ref):
    f32 = jnp.float32
    h1 = jnp.maximum(
        jnp.dot(hg_ref[...], w1g_ref[...], preferred_element_type=f32)
        + jnp.dot(hd_ref[...], w1d_ref[...], preferred_element_type=f32)
        + b1_ref[...], 0.0)
    logits = jnp.dot(h1, w2_ref[...], preferred_element_type=f32) + b2_ref[...]
    m = jnp.max(logits, axis=-1, keepdims=True)
    z = logits - m
    lse = jnp.log(jnp.sum(jnp.exp(z), axis=-1, keepdims=True))
    y = z - lse                                              # log_softmax (padded)
    y_ref[...] = y
    tl_ref[...] = jnp.broadcast_to(
        -jnp.mean(jnp.sum(y * oh_ref[...], axis=-1)), (1, 1))


def _prediction(hg_sel, hd_sel, pred, labels, pad_out=128):
    t, hdim = hg_sel.shape
    w1 = pred["w1"]                                          # [6H, 3H]
    # sample == [hg,hg,hg,hd,hd,hd]  ->  pre-sum replicated K-slices per half
    w1g = w1[0:hdim] + w1[hdim:2 * hdim] + w1[2 * hdim:3 * hdim]
    w1d = w1[3 * hdim:4 * hdim] + w1[4 * hdim:5 * hdim] + w1[5 * hdim:6 * hdim]
    w2 = pred["w2"]                                          # [3H, 2]
    ncls = w2.shape[1]
    # pad logits to 128 lanes; pad bias = -1e30 so softmax ignores the pad cols
    w2p = jnp.concatenate(
        [w2, jnp.zeros((w2.shape[0], pad_out - ncls), jnp.float32)], axis=1)
    b2p = jnp.concatenate(
        [pred["b2"], jnp.full((1, pad_out - ncls), -1e30, jnp.float32)], axis=1)
    onehot = jax.nn.one_hot(labels, pad_out, dtype=jnp.float32)

    args = (hg_sel, hd_sel, w1g, w1d, pred["b1"], w2p, b2p, onehot)
    y_pad, tl = pl.pallas_call(
        _pred_kernel,
        out_shape=(jax.ShapeDtypeStruct((t, pad_out), jnp.float32),
                   jax.ShapeDtypeStruct((1, 1), jnp.float32)),
        grid=(1,),
        in_specs=[_full_spec(a.shape) for a in args],
        out_specs=(_full_spec((t, pad_out)), _full_spec((1, 1))),
        compiler_params=pltpu.CompilerParams(
            dimension_semantics=("arbitrary",)),
    )(*args)
    return y_pad[:, :ncls], tl[0, 0]


# ---------------------------------------------------------------------------
# Parameter init (deterministic, xavier-normal-like; weights stored [in, out])
# ---------------------------------------------------------------------------
def _xavier_normal(key, out_dim, in_dim, gain=1.414):
    std = gain * jnp.sqrt(2.0 / (in_dim + out_dim))
    return std * jax.random.normal(key, (out_dim, in_dim), jnp.float32)


def init_params(key, node_dim_list, hidden_dim):
    keys = jax.random.split(key, 16)
    params = {"fc": []}
    for i, d in enumerate(node_dim_list):
        params["fc"].append({
            "w": _xavier_normal(keys[i], hidden_dim, d).T,                 # [in, H]
            "b": (0.01 * jax.random.normal(keys[i + 4], (hidden_dim,),
                                           jnp.float32)).reshape(1, -1),
        })

    def contrast(k0, k1):
        return {
            "w1": _xavier_normal(k0, hidden_dim, hidden_dim).T,
            "b1": jnp.zeros((1, hidden_dim), jnp.float32),
            "w2": _xavier_normal(k1, hidden_dim, hidden_dim).T,
            "b2": jnp.zeros((1, hidden_dim), jnp.float32),
        }

    params["gene_contrast"] = contrast(keys[8], keys[9])
    params["disease_contrast"] = contrast(keys[10], keys[11])
    in_sz, hid_sz = 6 * hidden_dim, 3 * hidden_dim
    params["pred"] = {
        "w1": _xavier_normal(keys[12], hid_sz, in_sz, gain=1.0).T,         # [6H, 3H]
        "b1": jnp.zeros((1, hid_sz), jnp.float32),
        "w2": _xavier_normal(keys[13], 2, hid_sz, gain=1.0).T,             # [3H, 2]
        "b2": jnp.zeros((1, 2), jnp.float32),
    }
    return params


# ---------------------------------------------------------------------------
# overall_model.forward
# ---------------------------------------------------------------------------
def overall_model_forward(params, features_list, pos_inter,
                          gene_idx, dis_idx, labels,
                          tau=0.5, lam=0.5, lam_out=0.5, lam_out_2=1.0):
    xg, xd = features_list

    # Kernel A: h + normalized contrast projection (bf16 matmuls, f32 acc)
    h_gene, zn_gene = _project_embed(xg, params["fc"][0],
                                     params["gene_contrast"], tau)
    h_dis, zn_dis = _project_embed(xd, params["fc"][1],
                                   params["disease_contrast"], tau)

    # Kernel B: flash-tiled contrast losses (pos shipped as bf16 mask)
    pos_bf16 = pos_inter.astype(jnp.bfloat16)
    lori_gene = _contrast_loss(zn_gene, pos_bf16)
    # TODO(synk): the disease head reuses pos_inter (needs its own positive-pair
    # mask in the reference; n_dis == n_gene in this toy setup).
    lori_dis = _contrast_loss(zn_dis, pos_bf16)
    inter_loss = lam * lori_gene + (1.0 - lam) * lori_dis
    max_loss = jnp.float32(0.0)    # stand-in (meta_path_model_2 undefined)
    s_loss = jnp.float32(0.0)

    # Row gather + sample replication: cheap O(t*H) glue in the wrapper
    hg_sel = jnp.take(h_gene, gene_idx, axis=0)
    hd_sel = jnp.take(h_dis, dis_idx, axis=0)
    sample = jnp.concatenate([hg_sel, hg_sel, hg_sel,
                              hd_sel, hd_sel, hd_sel], axis=1)

    # Kernel C: prediction MLP + log_softmax + NLL
    y, train_loss = _prediction(hg_sel, hd_sel, params["pred"], labels)

    total_loss = lam_out_2 * train_loss + lam_out * (inter_loss
                                                     + 0.1 * max_loss + s_loss)
    beta = jnp.ones((3,), jnp.float32) / 3.0   # stand-in uniform attention
    return y, total_loss, beta, sample


# ---------------------------------------------------------------------------
if __name__ == "__main__":
    key = jax.random.PRNGKey(0)
    k_param, k_fg, k_fd, k_pos = jax.random.split(key, 4)

    hidden_dim = 32
    node_dim_list = [16, 24]          # [gene feature dim, disease feature dim]
    n_gene, n_dis = 8, 8

    params = init_params(k_param, node_dim_list, hidden_dim)

    features_list = [
        jax.random.normal(k_fg, (n_gene, node_dim_list[0]), jnp.float32),
        jax.random.normal(k_fd, (n_dis, node_dim_list[1]), jnp.float32),
    ]
    # dense positive-pair mask (torch sparse `pos.to_dense()` equivalent)
    pos_inter = (jax.random.uniform(k_pos, (n_gene, n_gene)) > 0.7).astype(jnp.float32)
    pos_inter = jnp.maximum(pos_inter, jnp.eye(n_gene, dtype=jnp.float32))

    gene_idx = jnp.array([0, 2, 4, 6], dtype=jnp.int32)
    dis_idx = jnp.array([1, 3, 5, 7], dtype=jnp.int32)
    labels = jnp.array([0, 1, 0, 1], dtype=jnp.int32)

    y, total_loss, beta, sample = overall_model_forward(
        params, features_list, pos_inter, gene_idx, dis_idx, labels,
        tau=0.5, lam=0.5, lam_out=0.5, lam_out_2=1.0)

    jax.block_until_ready((y, total_loss, beta, sample))
    assert y.shape == (4, 2) and sample.shape == (4, 6 * hidden_dim)
    assert bool(jnp.isfinite(total_loss))
    print("KERNEL_OK")
</pallas_src>

<mosaic_0001>
module attributes {stable_mosaic.version = 11 : i64} {
  func.func @_embed_kernel(%arg0: i32, %arg1: memref<8x16xbf16, #tpu.memory_space<vmem>>, %arg2: memref<16x32xbf16, #tpu.memory_space<vmem>>, %arg3: memref<1x32xf32, #tpu.memory_space<vmem>>, %arg4: memref<32x32xbf16, #tpu.memory_space<vmem>>, %arg5: memref<1x32xf32, #tpu.memory_space<vmem>>, %arg6: memref<32x32xbf16, #tpu.memory_space<vmem>>, %arg7: memref<1x32xf32, #tpu.memory_space<vmem>>, %arg8: memref<8x32xf32, #tpu.memory_space<vmem>>, %arg9: memref<8x32xbf16, #tpu.memory_space<vmem>>) attributes {dimension_semantics = [#tpu.dimension_semantics<parallel>], iteration_bounds = array<i64: 1>, scalar_prefetch = 0 : i64, scratch_operands = 0 : i64, tpu.core_type = #tpu.core_type<tc>, window_params = [{transform_indices = @transform_0, window_bounds = array<i64: 8, 16>}, {pipeline_mode = #tpu.pipeline_mode<synchronous>, transform_indices = @transform_1, window_bounds = array<i64: 16, 32>}, {pipeline_mode = #tpu.pipeline_mode<synchronous>, transform_indices = @transform_2, window_bounds = array<i64: 1, 32>}, {pipeline_mode = #tpu.pipeline_mode<synchronous>, transform_indices = @transform_3, window_bounds = array<i64: 32, 32>}, {pipeline_mode = #tpu.pipeline_mode<synchronous>, transform_indices = @transform_4, window_bounds = array<i64: 1, 32>}, {pipeline_mode = #tpu.pipeline_mode<synchronous>, transform_indices = @transform_5, window_bounds = array<i64: 32, 32>}, {pipeline_mode = #tpu.pipeline_mode<synchronous>, transform_indices = @transform_6, window_bounds = array<i64: 1, 32>}, {transform_indices = @transform_7, window_bounds = array<i64: 8, 32>}, {transform_indices = @transform_8, window_bounds = array<i64: 8, 32>}]} {
    %c0 = arith.constant 0 : index
    %c0_0 = arith.constant 0 : index
    %0 = vector.load %arg1[%c0, %c0_0] : memref<8x16xbf16, #tpu.memory_space<vmem>>, vector<8x16xbf16>
    %c0_1 = arith.constant 0 : index
    %c0_2 = arith.constant 0 : index
    %1 = vector.load %arg2[%c0_1, %c0_2] : memref<16x32xbf16, #tpu.memory_space<vmem>>, vector<16x32xbf16>
    %cst = arith.constant dense<0.000000e+00> : vector<8x32xf32>
    %2 = tpu.matmul %0, %1, %cst {dimension_numbers = #tpu.dot_dimension_numbers<[1], [0], [0], [1], [0, 0, 1, 1], [], []>} : vector<8x16xbf16>, vector<16x32xbf16>, vector<8x32xf32> -> vector<8x32xf32>
    %c0_3 = arith.constant 0 : index
    %c0_4 = arith.constant 0 : index
    %3 = vector.load %arg3[%c0_3, %c0_4] : memref<1x32xf32, #tpu.memory_space<vmem>>, vector<1x32xf32>
    %4 = vector.broadcast %3 : vector<1x32xf32> to vector<8x32xf32>
    %5 = arith.addf %2, %4 : vector<8x32xf32>
    %cst_5 = arith.constant 0.000000e+00 : f32
    %6 = vector.broadcast %cst_5 : f32 to vector<8x32xf32>
    %7 = arith.cmpf ogt, %5, %6 : vector<8x32xf32>
    %8 = math.exp %5 : vector<8x32xf32>
    %cst_6 = arith.constant 1.000000e+00 : f32
    %9 = vector.broadcast %cst_6 : f32 to vector<8x32xf32>
    %10 = arith.subf %8, %9 : vector<8x32xf32>
    %11 = arith.select %7, %5, %10 : vector<8x32xi1>, vector<8x32xf32>
    %c0_7 = arith.constant 0 : index
    %c0_8 = arith.constant 0 : index
    %12 = vector.load %arg8[%c0_7, %c0_8] : memref<8x32xf32, #tpu.memory_space<vmem>>, vector<8x32xf32>
    tpu.vector_store %arg8[%c0_7, %c0_8], %11 {strides = array<i32>} : memref<8x32xf32, #tpu.memory_space<vmem>>, vector<8x32xf32>,
    %13 = arith.truncf %11 : vector<8x32xf32> to vector<8x32xbf16>
    %c0_9 = arith.constant 0 : index
    %c0_10 = arith.constant 0 : index
    %14 = vector.load %arg4[%c0_9, %c0_10] : memref<32x32xbf16, #tpu.memory_space<vmem>>, vector<32x32xbf16>
    %cst_11 = arith.constant dense<0.000000e+00> : vector<8x32xf32>
    %15 = tpu.matmul %13, %14, %cst_11 {dimension_numbers = #tpu.dot_dimension_numbers<[1], [0], [0], [1], [0, 0, 1, 1], [], []>} : vector<8x32xbf16>, vector<32x32xbf16>, vector<8x32xf32> -> vector<8x32xf32>
    %c0_12 = arith.constant 0 : index
    %c0_13 = arith.constant 0 : index
    %16 = vector.load %arg5[%c0_12, %c0_13] : memref<1x32xf32, #tpu.memory_space<vmem>>, vector<1x32xf32>
    %17 = vector.broadcast %16 : vector<1x32xf32> to vector<8x32xf32>
    %18 = arith.addf %15, %17 : vector<8x32xf32>
    %cst_14 = arith.constant 0.000000e+00 : f32
    %19 = vector.broadcast %cst_14 : f32 to vector<8x32xf32>
    %20 = arith.cmpf ogt, %18, %19 : vector<8x32xf32>
    %21 = math.exp %18 : vector<8x32xf32>
    %cst_15 = arith.constant 1.000000e+00 : f32
    %22 = vector.broadcast %cst_15 : f32 to vector<8x32xf32>
    %23 = arith.subf %21, %22 : vector<8x32xf32>
    %24 = arith.select %20, %18, %23 : vector<8x32xi1>, vector<8x32xf32>
    %25 = arith.truncf %24 : vector<8x32xf32> to vector<8x32xbf16>
    %c0_16 = arith.constant 0 : index
    %c0_17 = arith.constant 0 : index
    %26 = vector.load %arg6[%c0_16, %c0_17] : memref<32x32xbf16, #tpu.memory_space<vmem>>, vector<32x32xbf16>
    %cst_18 = arith.constant dense<0.000000e+00> : vector<8x32xf32>
    %27 = tpu.matmul %25, %26, %cst_18 {dimension_numbers = #tpu.dot_dimension_numbers<[1], [0], [0], [1], [0, 0, 1, 1], [], []>} : vector<8x32xbf16>, vector<32x32xbf16>, vector<8x32xf32> -> vector<8x32xf32>
    %c0_19 = arith.constant 0 : index
    %c0_20 = arith.constant 0 : index
    %28 = vector.load %arg7[%c0_19, %c0_20] : memref<1x32xf32, #tpu.memory_space<vmem>>, vector<1x32xf32>
    %29 = vector.broadcast %28 : vector<1x32xf32> to vector<8x32xf32>
    %30 = arith.addf %27, %29 : vector<8x32xf32>
    %31 = arith.mulf %30, %30 : vector<8x32xf32>
    %cst_21 = arith.constant dense<0.000000e+00> : vector<8xf32>
    %32 = vector.multi_reduction <add>, %31, %cst_21 [1] : vector<8x32xf32> to vector<8xf32>
    %33 = vector.shape_cast %32 : vector<8xf32> to vector<8x1xf32>
    %cst_22 = arith.constant 9.99999996E-13 : f32
    %34 = vector.broadcast %cst_22 : f32 to vector<8x1xf32>
    %35 = arith.addf %33, %34 : vector<8x1xf32>
    %36 = math.rsqrt %35 : vector<8x1xf32>
    %cst_23 = arith.constant 1.41421354 : f32
    %37 = vector.broadcast %cst_23 : f32 to vector<8x1xf32>
    %38 = arith.mulf %36, %37 : vector<8x1xf32>
    %39 = vector.broadcast %38 : vector<8x1xf32> to vector<8x32xf32>
    %40 = arith.mulf %30, %39 : vector<8x32xf32>
    %41 = arith.truncf %40 : vector<8x32xf32> to vector<8x32xbf16>
    %c0_24 = arith.constant 0 : index
    %c0_25 = arith.constant 0 : index
    %42 = vector.load %arg9[%c0_24, %c0_25] : memref<8x32xbf16, #tpu.memory_space<vmem>>, vector<8x32xbf16>
    tpu.vector_store %arg9[%c0_24, %c0_25], %41 {strides = array<i32>} : memref<8x32xbf16, #tpu.memory_space<vmem>>, vector<8x32xbf16>,
    return
  }
  func.func @transform_0(%arg0: i32) -> (i32, i32) {
    %c0_i32 = arith.constant 0 : i32
    %c0_i32_0 = arith.constant 0 : i32
    return %arg0, %c0_i32 : i32, i32
  }
  func.func @transform_1(%arg0: i32) -> (i32, i32) {
    %c0_i32 = arith.constant 0 : i32
    %c0_i32_0 = arith.constant 0 : i32
    %c0_i32_1 = arith.constant 0 : i32
    return %c0_i32, %c0_i32_0 : i32, i32
  }
  func.func @transform_2(%arg0: i32) -> (i32, i32) {
    %c0_i32 = arith.constant 0 : i32
    %c0_i32_0 = arith.constant 0 : i32
    %c0_i32_1 = arith.constant 0 : i32
    return %c0_i32, %c0_i32_0 : i32, i32
  }
  func.func @transform_3(%arg0: i32) -> (i32, i32) {
    %c0_i32 = arith.constant 0 : i32
    %c0_i32_0 = arith.constant 0 : i32
    %c0_i32_1 = arith.constant 0 : i32
    return %c0_i32, %c0_i32_0 : i32, i32
  }
  func.func @transform_4(%arg0: i32) -> (i32, i32) {
    %c0_i32 = arith.constant 0 : i32
    %c0_i32_0 = arith.constant 0 : i32
    %c0_i32_1 = arith.constant 0 : i32
    return %c0_i32, %c0_i32_0 : i32, i32
  }
  func.func @transform_5(%arg0: i32) -> (i32, i32) {
    %c0_i32 = arith.constant 0 : i32
    %c0_i32_0 = arith.constant 0 : i32
    %c0_i32_1 = arith.constant 0 : i32
    return %c0_i32, %c0_i32_0 : i32, i32
  }
  func.func @transform_6(%arg0: i32) -> (i32, i32) {
    %c0_i32 = arith.constant 0 : i32
    %c0_i32_0 = arith.constant 0 : i32
    %c0_i32_1 = arith.constant 0 : i32
    return %c0_i32, %c0_i32_0 : i32, i32
  }
  func.func @transform_7(%arg0: i32) -> (i32, i32) {
    %c0_i32 = arith.constant 0 : i32
    %c0_i32_0 = arith.constant 0 : i32
    return %arg0, %c0_i32 : i32, i32
  }
  func.func @transform_8(%arg0: i32) -> (i32, i32) {
    %c0_i32 = arith.constant 0 : i32
    %c0_i32_0 = arith.constant 0 : i32
    return %arg0, %c0_i32 : i32, i32
  }
}

</mosaic_0001>

<bundles_post_ra>
// kernel: tpu_custom_call.1
= control target key start
LH: loop header
LB: loop body
LE: loop exit
PB: predicated region body
PF: predicated region fallthrough
CT: control target
= control target key end

     0   :  { %14 = vsyncpa [#allocation3], 0  ;;  %s548_s0 = inlined_call_operand.hbm [shape: bf16[8,16], index: 0, kind: input, shape index: {}]   ;;  %s549_s1 = inlined_call_operand.hbm [shape: bf16[16,32], index: 1, kind: input, shape index: {}]   ;;  %s550_s2 = inlined_call_operand.vmem [shape: f32[1,32], index: 2, kind: input, shape index: {}]   ;;  %s551_s3 = inlined_call_operand.hbm [shape: bf16[32,32], index: 3, kind: input, shape index: {}]   ;;  %s552_s4 = inlined_call_operand.vmem [shape: f32[1,32], index: 4, kind: input, shape index: {}]   ;;  %s553_s5 = inlined_call_operand.hbm [shape: bf16[32,32], index: 5, kind: input, shape index: {}]   ;;  %s554_s6 = inlined_call_operand.vmem [shape: f32[1,32], index: 6, kind: input, shape index: {}]   ;;  %s555_s7 = inlined_call_operand.hbm [shape: f32[8,32], index: 7, kind: output, shape index: {0}]   ;;  %s556_s8 = inlined_call_operand.hbm [shape: bf16[8,32], index: 8, kind: output, shape index: {1}]  }
   0x1   :  { %15 = vsyncpa [#allocation6], 0 }
   0x2   :  { %16 = vsyncpa [#allocation9], 0 }
   0x3   :  { %17 = vsyncpa [#allocation4], 0  ;;  %s34_s29 = sshll.u32 %s549_s1, 4  ;;  %s35_s29 = int_to_ptr.hbm [resolvable:$true] %s34_s29 }
   0x4   :  { %18 = vsyncpa [#allocation12], 0  ;;  %s464_s30 = smov [#allocation5]   ;;  %s24_s12 = sshll.u32 %s548_s0, 4  ;;  %s25_s12 = int_to_ptr.hbm [resolvable:$true] %s24_s12 }
   0x5   :  { %s36_s9 = sshll.u32 %s464_s30, 4  ;;  %s465_s13 = smov 64   ;;  %s37_s9 = int_to_ptr.vmem [resolvable:$true] %s36_s9 }
   0x6   :  { %s466_s14 = smov 4   ;;  %s467_s15 = smov [#allocation2]  }
   0x7   :  { %42 = dma.hbm_to_vmem [thread:$0]  %s35_s29, 128, %s37_s9, [#allocation6], %s465_s13, %s465_s13, %s466_s14  }
   0x8   :  { %s26_s16 = sshll.u32 %s467_s15, 4  ;;  %s49_s19 = sshll.u32 %s551_s3, 4  ;;  %s27_s16 = int_to_ptr.vmem [resolvable:$true] %s26_s16  ;;  %s50_s19 = int_to_ptr.hbm [resolvable:$true] %s49_s19 }
   0x9   :  { %29 = dma.hbm_to_vmem [thread:$0]  %s25_s12, 64, %s27_s16, [#allocation3]  }
   0xa   :  { %s64_s21 = sshll.u32 %s553_s5, 4  ;;  %s468_s22 = smov [#allocation7]   ;;  %s65_s21 = int_to_ptr.hbm [resolvable:$true] %s64_s21 }
   0xb   :  { %s51_s23 = sshll.u32 %s468_s22, 4  ;;  %s469_s0 = smov [#allocation8]   ;;  %s52_s23 = int_to_ptr.vmem [resolvable:$true] %s51_s23 }
   0xc   :  { %57 = dma.hbm_to_vmem [thread:$0]  %s50_s19, 256, %s52_s23, [#allocation6], %s465_s13, %s465_s13, %s466_s14  }
   0xd   :  { %s66_s24 = sshll.u32 %s469_s0, 4  ;;  %s67_s24 = int_to_ptr.vmem [resolvable:$true] %s66_s24 }
   0xe   :  { %72 = dma.hbm_to_vmem [thread:$0]  %s65_s21, 256, %s67_s24, [#allocation9], %s465_s13, %s465_s13, %s466_s14  }
   0xf   :  { %454 = dma.done.wait [#allocation3], 64  }
  0x10   :  { %455 = vsyncadd [#allocation3], 4294967232 }
  0x11   :  { %456 = dma.done.wait [#allocation6], 384  }
  0x12   :  { %457 = vsyncadd [#allocation6], 4294966912 }
  0x13   :  { %458 = dma.done.wait [#allocation9], 256  }
  0x14   :  { %459 = vsyncadd [#allocation9], 4294967040  ;;  %v288_v0 = vld [vmem:[#allocation5] sm:$0xff]  ;;  %v92_v1 = vld [vmem:[#allocation2] sm:$0xf]  ;;  %vm105_vm0 = vcmask 130048  }
  0x15   :  { %116 = vmatpush.bf16.msra.mxu0 %v288_v0  ;;  %v290_v2 = vld [vmem:[#allocation7 + $0x8] sm:$0xff]  ;;  %v289_v3 = vld [vmem:[#allocation7] sm:$0xff]  ;;  %v301_v4 = vld [vmem:[%s550_s2] ss:$0 sm:$0xff]  ;;  %vm127_vm1 = vcmask 261120   ;;  %s235_s29 = sshll.u32 %s555_s7, 4  ;;  %s236_s29 = int_to_ptr.hbm [resolvable:$true] %s235_s29 }
  0x16   :  { %159 = vmatpush.bf16.msra.mxu1 %v290_v2  ;;  %v292_v13 = vld [vmem:[#allocation8 + $0x8] sm:$0xff]  ;;  %v291_v14 = vld [vmem:[#allocation8] sm:$0xff]  ;;  %s470_s30 = smov [#allocation10]   ;;  %s246_s12 = sshll.u32 %s556_s8, 4  ;;  %vm226_vm7 = vcmask 257024   ;;  %s247_s12 = int_to_ptr.hbm [resolvable:$true] %s246_s12 }
  0x17   :  { %201 = vmatpush.bf16.msra.mxu2 %v292_v13  ;;  %v302_v15 = vld [vmem:[%s552_s4] ss:$0 sm:$0xff]  ;;  %s233_s9 = sshll.u32 %s470_s30, 4  ;;  %s234_s9 = int_to_ptr.vmem [resolvable:$true] %s233_s9 }
  0x18   :  { %267 = vmatmul.msk.bf16.vlgmr.msra.gmra.mxu0 %vm105_vm0, %v92_v1  ;;  %v303_v24 = vld [vmem:[%s554_s6] ss:$0 sm:$0xff]  ;;  %s471_s6 = smov [#allocation11]  }
  0x19   :  { %s244_s7 = sshll.u32 %s471_s6, 4  ;;  %s245_s7 = int_to_ptr.vmem [resolvable:$true] %s244_s7 }
  0x1a   :  { %160 = vmatpush.bf16.msra.mxu1 %v289_v3 }
  0x1b   :  { %202 = vmatpush.bf16.msra.mxu2 %v291_v14 }
  0x95   :  { %v118_v5 = vpop.f32.mrf.mxu0 }
  0x96   :  { %v119_v6 = vadd.f32 %v301_v4, %v118_v5 }
  0x98   :  { %v123_v7 = vmul.f32 1.442695, %v119_v6  ;;  %vm122_vm2 = vcmp.gt.f32.partialorder %v119_v6, 0.0 }
  0x9a   :  { %304 = vpow2.f32 %v123_v7 }
  0x9d   :  { %v120_v8 = vpop.f32.mrf.mxu0 }
  0xa0   :  { %v305_v9 = vpop.eup %304 }
  0xa1   :  { %v268_v10 = vadd.f32 -1.0, %v305_v9 }
  0xa3   :  { %v126_v11 = vsel %vm122_vm2, %v119_v6, %v268_v10 }
  0xa4   :  { %v129_v12 = vpack.c.bf16 %v126_v11, %v126_v11  ;;  %128 = vst.msk [vmem:[#allocation10] sm:$0xff] %vm127_vm1, %v126_v11 }
  0xa5   :  { %238 = dma.vmem_to_hbm [thread:$0]  %s234_s9, 128, %s236_s29, [#allocation4]  }
  0xa6   :  { %277 = vmatmul.msk.bf16.vlgmr.msra.gmra.mxu1 %vm127_vm1, %v129_v12 }
 0x123   :  { %v162_v16 = vpop.f32.mrf.mxu1 }
 0x124   :  { %v163_v17 = vadd.f32 %v302_v15, %v162_v16 }
 0x126   :  { %v167_v18 = vmul.f32 1.442695, %v163_v17  ;;  %vm166_vm3 = vcmp.gt.f32.partialorder %v163_v17, 0.0 }
 0x128   :  { %306 = vpow2.f32 %v167_v18 }
 0x12b   :  { %v164_v19 = vpop.f32.mrf.mxu1 }
 0x12e   :  { %v307_v20 = vpop.eup %306 }
 0x12f   :  { %v278_v21 = vadd.f32 -1.0, %v307_v20 }
 0x131   :  { %v170_v22 = vsel %vm166_vm3, %v163_v17, %v278_v21 }
 0x132   :  { %v171_v23 = vpack.c.bf16 %v170_v22, %v170_v22 }
 0x134   :  { %287 = vmatmul.msk.bf16.vlgmr.msra.gmra.mxu2 %vm127_vm1, %v171_v23 }
 0x1b7   :  { %v204_v25 = vpop.f32.mrf.mxu2 }
 0x1b8   :  { %v205_v26 = vadd.f32 %v303_v24, %v204_v25 }
 0x1ba   :  { %v208_v27 = vmul.f32 %v205_v26, %v205_v26 }
 0x1bc   :  { %v209_v28 = vsel %vm127_vm1, %v208_v27, 0.0 }
 0x1bd   :  { %210 = vadd.xlane.f32.xlu0 %v209_v28 }
 0x1bf   :  { %v206_v29 = vpop.f32.mrf.mxu2 }
 0x230   :  { %v211_v30 = vpop.xlane.xlu0 %210 }
 0x231   :  { %v212_v31 = vadd.f32 1e-12, %v211_v30 }
 0x233   :  { %308 = vrsqrt.f32 %v212_v31  ;;  %vm219_vm5 = vweird.f32 %v212_v31 }
 0x239   :  { %v309_v32 = vpop.eup %308 }
 0x23a   :  { %v214_v33 = vmul.f32 %v309_v32, %v212_v31  ;;  %vm220_vm4 = vweird.f32 %v309_v32 }
 0x23b   :  { %vm221_vm6 = vmor %vm219_vm5, %vm220_vm4 }
 0x23c   :  { %v215_v34 = vmul.f32 %v309_v32, %v214_v33 }
 0x23e   :  { %v216_v35 = vmul.f32 0.5, %v215_v34 }
 0x240   :  { %v217_v36 = vsub.f32 1.5, %v216_v35 }
 0x242   :  { %v218_v37 = vmul.f32 %v309_v32, %v217_v36 }
 0x244   :  { %v222_v38 = vsel %vm221_vm6, %v309_v32, %v218_v37 }
 0x245   :  { %v223_v39 = vmul.f32 1.4142135, %v222_v38 }
 0x247   :  { %v224_v40 = vmul.f32 %v223_v39, %v205_v26 }
 0x249   :  { %v225_v41 = vpack.c.bf16 %v224_v40, %v224_v40 }
 0x24b   :  { %227 = vst.msk [vmem:[#allocation11] sm:$0xf] %vm226_vm7, %v225_v41 }
 0x24c   :  { %249 = dma.vmem_to_hbm [thread:$0]  %s245_s7, 64, %s247_s12, [#allocation12]  }
 0x24d   :  { %460 = dma.done.wait [#allocation4], 128  }
 0x24e   :  { %461 = vsyncadd [#allocation4], 4294967168 }
 0x24f   :  { %462 = dma.done.wait [#allocation12], 64  }
 0x250   :  { %463 = vsyncadd [#allocation12], 4294967232 }
 0x251   :  { %258 = vsyncpa [#allocation3], 1 }
 0x252   :  { %259 = vsyncpa [#allocation6], 1 }
 0x253   :  { %260 = vsyncpa [#allocation9], 1 }
 0x254   :  { %261 = vsyncpa [#allocation4], 1 }
 0x255   :  { %262 = vsyncpa [#allocation12], 1 }

</bundles_post_ra>
